<compile_context>
chip_gen: v5e
topology: v5e:2x2
jax: 0.10.0
libtpu: 0.0.40
codegen_flags: <defaults>
</compile_context>

<pallas_src>
import jax
import jax.numpy as jnp
from jax.experimental import pallas as pl
from jax.experimental.pallas import tpu as pltpu


_SMALL_PROBLEM_BYTES = 4 * 1024 * 1024   # below this, one full-extent block


def _distance_kernel(support_ref, w_inp_ref, w_ones_ref, out_ref):
    eps = 1e-10
    s = support_ref[...].astype(jnp.float32)                       # [tile_s, T*D]

    # Target dot product on the MXU: the block-diagonal weight selects each
    # task's own D-slice, so no cross-lane (XLU) reduction is needed.
    dot = jnp.dot(s, w_inp_ref[...],
                  preferred_element_type=jnp.float32,
                  precision=jax.lax.Precision.HIGHEST)             # [tile_s, T]

    # Squared magnitude: one VPU elementwise square + MXU segment-sum.
    sum_sq = jnp.dot(s * s, w_ones_ref[...],
                     preferred_element_type=jnp.float32,
                     precision=jax.lax.Precision.HIGHEST)          # [tile_s, T]

    # torch clamp(eps, inf).rsqrt() == rsqrt(max(x, eps)); rsqrt is an EUP op.
    inv_mag = jax.lax.rsqrt(jnp.maximum(sum_sq, eps))

    # NOTE: for a partial last S-block the padded rows compute garbage; that is
    # only safe because Pallas masks the store to the real [S, T] extent. Do
    # not start consuming those rows (e.g. via accumulation or manual DMA).
    out_ref[...] = (dot * inv_mag).astype(out_ref.dtype)


def _vmem_capacity_bytes():
    try:
        return int(pltpu.get_tpu_info().vmem_capacity_bytes)
    except Exception:
        return 64 * 1024 * 1024            # conservative fallback (v7x per-TC)


def _padded_row_bytes(T, D, itemsize=4):
    # lane-padded width of the folded [S, T*D] block
    return ((T * D + 127) // 128) * 128 * itemsize


def _choose_tile_s(S, T, D):
    """S-tile sized by padded block bytes against the real VMEM capacity,
    with an even / near-equal block count for v7x's two TensorCores."""
    row_bytes = _padded_row_bytes(T, D)

    # Small problems: single full-extent block, no pipelining machinery.
    if S * row_bytes <= _SMALL_PROBLEM_BYTES:
        return S

    budget = min(_vmem_capacity_bytes() // 2, 48 * 1024 * 1024)
    # Per grid step: 2x support block (double buffer) + ~1x block for the
    # squared temporary; weights/output/compiler scratch get a 4 MiB margin.
    per_block = (budget - 4 * 1024 * 1024) // 3
    tile = max(8, min(S, per_block // row_bytes))
    tile = (tile // 8) * 8                          # sublane-aligned rows
    if tile >= S:
        return S

    # Balance across the two v7x TensorCores: even block count, equal bytes.
    n_blocks = -(-S // tile)
    n_blocks = ((n_blocks + 1) // 2) * 2
    return ((-(-S // n_blocks) + 7) // 8) * 8


def _vmem_limit_bytes(tile_s, T, D):
    block = tile_s * _padded_row_bytes(T, D)
    cap = min(_vmem_capacity_bytes() // 2, 48 * 1024 * 1024)
    return int(max(32 * 1024 * 1024, min(3 * block + 4 * 1024 * 1024, cap)))


def distance_network(support_set, input_image, *, tile_s=None):
    """support_set: [S, T, D] f32, input_image: [T, D] f32 -> [T, S] f32."""
    S, T, D = support_set.shape
    assert input_image.shape == (T, D)
    K = T * D

    # Free (bitcast) row-major reshape: support crosses HBM exactly once.
    support_2d = support_set.reshape(S, K)

    # Tiny [T*D, T] block-diagonal weights (built once, resident in VMEM):
    #   w_ones[t*D+d, t'] = (t == t')
    #   w_inp [t*D+d, t'] = (t == t') * input_image[t, d]
    eye_rep = jnp.repeat(jnp.eye(T, dtype=jnp.float32), D, axis=0)      # [K, T]
    w_inp = eye_rep * input_image.astype(jnp.float32).reshape(K, 1)
    w_ones = eye_rep

    if tile_s is None:
        tile_s = _choose_tile_s(S, T, D)
    vmem_limit = _vmem_limit_bytes(tile_s, T, D)
    grid = (pl.cdiv(S, tile_s),)

    out_st = pl.pallas_call(
        _distance_kernel,
        out_shape=jax.ShapeDtypeStruct((S, T), jnp.float32),
        grid=grid,
        in_specs=[
            pl.BlockSpec((tile_s, K), lambda i: (i, 0)),   # streamed support
            pl.BlockSpec((K, T), lambda i: (0, 0)),        # tiny, constant block
            pl.BlockSpec((K, T), lambda i: (0, 0)),        # tiny, constant block
        ],
        out_specs=pl.BlockSpec((tile_s, T), lambda i: (i, 0)),
        compiler_params=pltpu.CompilerParams(
            dimension_semantics=("parallel",),   # shards S-blocks across v7x TCs
            vmem_limit_bytes=vmem_limit,
        ),
    )(support_2d, w_inp, w_ones)

    # [S, T] -> [T, S]: touches only S*T*4 bytes, negligible vs. the
    # S*T*D*4-byte support stream the kernel reads.
    return out_st.T


def _reference(support_set, input_image):
    eps = 1e-10
    sum_sq = jnp.sum(support_set ** 2, axis=-1)                        # [S, T]
    inv_mag = jax.lax.rsqrt(jnp.maximum(sum_sq, eps))                  # [S, T]
    dot = jnp.sum(support_set * input_image[None, :, :], axis=-1)      # [S, T]
    return (dot * inv_mag).T                                           # [T, S]


if __name__ == "__main__":
    key = jax.random.PRNGKey(0)
    k1, k2, k3, k4 = jax.random.split(key, 4)

    # 1) Module's documented toy shape: sequence_length=8, task_num=2, D=64.
    S, T, D = 8, 2, 64
    support_set = jax.random.normal(k1, (S, T, D), dtype=jnp.float32)
    input_image = jax.random.normal(k2, (T, D), dtype=jnp.float32)
    out = distance_network(support_set, input_image)
    jax.block_until_ready(out)
    assert out.shape == (T, S)
    assert jnp.allclose(out, _reference(support_set, input_image),
                        atol=1e-4, rtol=1e-4)

    # 2) Larger, non-divisible S: fits in VMEM -> single full-extent block path.
    S2, T2, D2 = 1600, 4, 64
    support_set2 = jax.random.normal(k3, (S2, T2, D2), dtype=jnp.float32)
    input_image2 = jax.random.normal(k4, (T2, D2), dtype=jnp.float32)
    ref2 = _reference(support_set2, input_image2)
    out2 = distance_network(support_set2, input_image2)
    jax.block_until_ready(out2)
    assert out2.shape == (T2, S2)
    assert jnp.allclose(out2, ref2, atol=1e-4, rtol=1e-4)

    # 3) Same data with a forced small tile: exercises the pipelined grid path
    #    with a partial last block (1600 = 3*512 + 64) at small sizes.
    out3 = distance_network(support_set2, input_image2, tile_s=512)
    jax.block_until_ready(out3)
    assert jnp.allclose(out3, ref2, atol=1e-4, rtol=1e-4)

    print("KERNEL_OK")
</pallas_src>

<mosaic_0001>
module attributes {stable_mosaic.version = 11 : i64} {
  func.func @_distance_kernel(%arg0: i32, %arg1: memref<8x128xf32, #tpu.memory_space<vmem>>, %arg2: memref<128x2xf32, #tpu.memory_space<vmem>>, %arg3: memref<128x2xf32, #tpu.memory_space<vmem>>, %arg4: memref<8x2xf32, #tpu.memory_space<vmem>>) attributes {dimension_semantics = [#tpu.dimension_semantics<parallel>], iteration_bounds = array<i64: 1>, scalar_prefetch = 0 : i64, scratch_operands = 0 : i64, tpu.core_type = #tpu.core_type<tc>, window_params = [{transform_indices = @transform_0, window_bounds = array<i64: 8, 128>}, {pipeline_mode = #tpu.pipeline_mode<synchronous>, transform_indices = @transform_1, window_bounds = array<i64: 128, 2>}, {pipeline_mode = #tpu.pipeline_mode<synchronous>, transform_indices = @transform_2, window_bounds = array<i64: 128, 2>}, {transform_indices = @transform_3, window_bounds = array<i64: 8, 2>}]} {
    %c0 = arith.constant 0 : index
    %c0_0 = arith.constant 0 : index
    %0 = vector.load %arg1[%c0, %c0_0] : memref<8x128xf32, #tpu.memory_space<vmem>>, vector<8x128xf32>
    %c0_1 = arith.constant 0 : index
    %c0_2 = arith.constant 0 : index
    %1 = vector.load %arg2[%c0_1, %c0_2] : memref<128x2xf32, #tpu.memory_space<vmem>>, vector<128x2xf32>
    %cst = arith.constant dense<0.000000e+00> : vector<8x2xf32>
    %2 = tpu.matmul %0, %1, %cst {dimension_numbers = #tpu.dot_dimension_numbers<[1], [0], [0], [1], [0, 0, 1, 1], [], []>, precision = #tpu.contract_precision<fp32>} : vector<8x128xf32>, vector<128x2xf32>, vector<8x2xf32> -> vector<8x2xf32>
    %3 = arith.mulf %0, %0 : vector<8x128xf32>
    %c0_3 = arith.constant 0 : index
    %c0_4 = arith.constant 0 : index
    %4 = vector.load %arg3[%c0_3, %c0_4] : memref<128x2xf32, #tpu.memory_space<vmem>>, vector<128x2xf32>
    %cst_5 = arith.constant dense<0.000000e+00> : vector<8x2xf32>
    %5 = tpu.matmul %3, %4, %cst_5 {dimension_numbers = #tpu.dot_dimension_numbers<[1], [0], [0], [1], [0, 0, 1, 1], [], []>, precision = #tpu.contract_precision<fp32>} : vector<8x128xf32>, vector<128x2xf32>, vector<8x2xf32> -> vector<8x2xf32>
    %cst_6 = arith.constant 1.000000e-10 : f32
    %6 = vector.broadcast %cst_6 : f32 to vector<8x2xf32>
    %7 = arith.maximumf %5, %6 : vector<8x2xf32>
    %8 = math.rsqrt %7 : vector<8x2xf32>
    %9 = arith.mulf %2, %8 : vector<8x2xf32>
    %c0_7 = arith.constant 0 : index
    %c0_8 = arith.constant 0 : index
    %10 = vector.load %arg4[%c0_7, %c0_8] : memref<8x2xf32, #tpu.memory_space<vmem>>, vector<8x2xf32>
    tpu.vector_store %arg4[%c0_7, %c0_8], %9 {strides = array<i32>} : memref<8x2xf32, #tpu.memory_space<vmem>>, vector<8x2xf32>,
    return
  }
  func.func @transform_0(%arg0: i32) -> (i32, i32) {
    %c0_i32 = arith.constant 0 : i32
    %c0_i32_0 = arith.constant 0 : i32
    return %arg0, %c0_i32 : i32, i32
  }
  func.func @transform_1(%arg0: i32) -> (i32, i32) {
    %c0_i32 = arith.constant 0 : i32
    %c0_i32_0 = arith.constant 0 : i32
    %c0_i32_1 = arith.constant 0 : i32
    return %c0_i32, %c0_i32_0 : i32, i32
  }
  func.func @transform_2(%arg0: i32) -> (i32, i32) {
    %c0_i32 = arith.constant 0 : i32
    %c0_i32_0 = arith.constant 0 : i32
    %c0_i32_1 = arith.constant 0 : i32
    return %c0_i32, %c0_i32_0 : i32, i32
  }
  func.func @transform_3(%arg0: i32) -> (i32, i32) {
    %c0_i32 = arith.constant 0 : i32
    %c0_i32_0 = arith.constant 0 : i32
    return %arg0, %c0_i32 : i32, i32
  }
}

</mosaic_0001>

<bundles_post_ra>
// kernel: tpu_custom_call.1
= control target key start
LH: loop header
LB: loop body
LE: loop exit
PB: predicated region body
PF: predicated region fallthrough
CT: control target
= control target key end

     0   :  { %vm742_vm3 = vcmask 15360   ;;  %s1370_s1 = inlined_call_operand.vmem [shape: f32[128,2], index: 1, kind: input, shape index: {}]   ;;  %s1371_s2 = inlined_call_operand.vmem [shape: f32[128,2], index: 2, kind: input, shape index: {}]   ;;  %s1372_s0 = inlined_call_operand.vmem [shape: f32[8,128], index: 0, kind: input, shape index: {}]   ;;  %s1373_s3 = inlined_call_operand.vmem [shape: f32[8,2], index: 3, kind: output, shape index: {}]  }
   0x1   :  { %v30_v0 = vld [vmem:[%s1370_s1 + $0x78] sm:$0xff]  ;;  %v29_v1 = vld [vmem:[%s1370_s1 + $0x70] sm:$0xff]  ;;  %v28_v2 = vld [vmem:[%s1370_s1 + $0x68] sm:$0xff] }
   0x2   :  { %v779_v3 = vand.u32 4294901760, %v30_v0  ;;  %v781_v4 = vand.u32 4294901760, %v29_v1  ;;  %v783_v5 = vand.u32 4294901760, %v28_v2  ;;  %v27_v6 = vld [vmem:[%s1370_s1 + $0x60] sm:$0xff]  ;;  %v26_v7 = vld [vmem:[%s1370_s1 + $0x58] sm:$0xff]  ;;  %v25_v8 = vld [vmem:[%s1370_s1 + $0x50] sm:$0xff] }
   0x3   :  { %v794_v9 = vand.u32 4294901760, %v27_v6  ;;  %v796_v10 = vand.u32 4294901760, %v26_v7  ;;  %v798_v11 = vand.u32 4294901760, %v25_v8  ;;  %v24_v12 = vld [vmem:[%s1370_s1 + $0x48] sm:$0xff]  ;;  %v23_v13 = vld [vmem:[%s1370_s1 + $0x40] sm:$0xff]  ;;  %v22_v21 = vld [vmem:[%s1370_s1 + $0x38] sm:$0xff] }
   0x4   :  { %32 = vmatpush.msra.mxu0 %v779_v3  ;;  %v808_v14 = vsub.f32 %v30_v0, %v779_v3  ;;  %v811_v15 = vsub.f32 %v29_v1, %v781_v4  ;;  %228 = vmatpush.msra.mxu3 %v779_v3  ;;  %v815_v16 = vsub.f32 %v28_v2, %v783_v5  ;;  %v817_v17 = vand.u32 4294901760, %v24_v12  ;;  %v21_v34 = vld [vmem:[%s1370_s1 + $0x30] sm:$0xff]  ;;  %v20_v35 = vld [vmem:[%s1370_s1 + $0x28] sm:$0xff]  ;;  %v19_v40 = vld [vmem:[%s1370_s1 + $0x20] sm:$0xff] }
   0x5   :  { %v820_v18 = vsub.f32 %v27_v6, %v794_v9  ;;  %v823_v19 = vsub.f32 %v26_v7, %v796_v10  ;;  %v826_v20 = vsub.f32 %v25_v8, %v798_v11  ;;  %v836_v25 = vand.u32 4294901760, %v23_v13  ;;  %v18_v48 = vld [vmem:[%s1370_s1 + $0x18] sm:$0xff]  ;;  %v17_v53 = vld [vmem:[%s1370_s1 + $0x10] sm:$0xff]  ;;  %v16_v60 = vld [vmem:[%s1370_s1 + $0x8] sm:$0xff] }
   0x6   :  { %175 = vmatpush.msra.mxu2 %v808_v14  ;;  %34 = vmatpush.msra.mxu0 %v781_v4  ;;  %v1390_v22 = vand.u32 4294901760, %v808_v14  ;;  %v1387_v23 = vand.u32 4294901760, %v811_v15  ;;  %v1386_v24 = vand.u32 4294901760, %v815_v16  ;;  %v842_v28 = vsub.f32 %v24_v12, %v817_v17  ;;  %v388_v55 = vld [vmem:[%s1371_s2 + $0x78] sm:$0xff]  ;;  %v387_v63 = vld [vmem:[%s1371_s2 + $0x70] sm:$0xff]  ;;  %v15_v6 = vld [vmem:[%s1370_s1] sm:$0xff] }
   0x7   :  { %230 = vmatpush.msra.mxu3 %v781_v4  ;;  %v1384_v26 = vand.u32 4294901760, %v820_v18  ;;  %v1382_v27 = vand.u32 4294901760, %v823_v19  ;;  %v855_v32 = vand.u32 4294901760, %v22_v21  ;;  %v1381_v33 = vand.u32 4294901760, %v826_v20 }
   0x8   :  { %178 = vmatpush.msra.mxu2 %v811_v15  ;;  %36 = vmatpush.msra.mxu0 %v783_v5  ;;  %v75_v29 = vsub.f32 %v808_v14, %v1390_v22  ;;  %v81_v30 = vsub.f32 %v811_v15, %v1387_v23  ;;  %v87_v31 = vsub.f32 %v815_v16, %v1386_v24  ;;  %v1379_v44 = vand.u32 4294901760, %v842_v28 }
   0x9   :  { %232 = vmatpush.msra.mxu3 %v783_v5  ;;  %v93_v38 = vsub.f32 %v820_v18, %v1384_v26  ;;  %v871_v39 = vsub.f32 %v23_v13, %v836_v25  ;;  %v99_v41 = vsub.f32 %v823_v19, %v1382_v27  ;;  %v881_v42 = vsub.f32 %v22_v21, %v855_v32  ;;  %v386_v13 = vld [vmem:[%s1371_s2 + $0x68] sm:$0xff] }
   0xa   :  { %v76_v36 = vand.u32 4294901760, %v75_v29  ;;  %181 = vmatpush.msra.mxu2 %v815_v16  ;;  %38 = vmatpush.msra.mxu0 %v794_v9  ;;  %v82_v37 = vand.u32 4294901760, %v81_v30  ;;  %v88_v43 = vand.u32 4294901760, %v87_v31  ;;  %v885_v45 = vand.u32 4294901760, %v21_v34 }
   0xb   :  { %234 = vmatpush.msra.mxu3 %v794_v9  ;;  %v887_v46 = vand.u32 4294901760, %v20_v35  ;;  %v891_v47 = vand.u32 4294901760, %v19_v40  ;;  %v94_v49 = vand.u32 4294901760, %v93_v38  ;;  %v105_v50 = vsub.f32 %v826_v20, %v1381_v33 }
   0xc   :  { %77 = vmatpush.msra.mxu1 %v76_v36  ;;  %184 = vmatpush.msra.mxu2 %v820_v18  ;;  %v1378_v51 = vand.u32 4294901760, %v871_v39  ;;  %v902_v52 = vsub.f32 %v21_v34, %v885_v45  ;;  %v1377_v54 = vand.u32 4294901760, %v881_v42  ;;  %v100_v56 = vand.u32 4294901760, %v99_v41 }
   0xd   :  { %40 = vmatpush.msra.mxu0 %v796_v10  ;;  %236 = vmatpush.msra.mxu3 %v796_v10  ;;  %v111_v57 = vsub.f32 %v842_v28, %v1379_v44  ;;  %v918_v58 = vsub.f32 %v20_v35, %v887_v46  ;;  %v920_v59 = vand.u32 4294901760, %v18_v48  ;;  %v928_v61 = vsub.f32 %v19_v40, %v891_v47 }
   0xe   :  { %83 = vmatpush.msra.mxu1 %v82_v37  ;;  %187 = vmatpush.msra.mxu2 %v823_v19  ;;  %v930_v62 = vand.u32 4294901760, %v17_v53  ;;  %v106_v0 = vand.u32 4294901760, %v105_v50  ;;  %v117_v1 = vsub.f32 %v871_v39, %v1378_v51  ;;  %v1375_v2 = vand.u32 4294901760, %v902_v52  ;;  %v385_v37 = vld [vmem:[%s1371_s2 + $0x60] sm:$0xff]  ;;  %v384_v50 = vld [vmem:[%s1371_s2 + $0x58] sm:$0xff] }
   0xf   :  { %42 = vmatpush.msra.mxu0 %v798_v11  ;;  %238 = vmatpush.msra.mxu3 %v798_v11  ;;  %v943_v7 = vand.u32 4294901760, %v388_v55  ;;  %v123_v8 = vsub.f32 %v881_v42, %v1377_v54  ;;  %v950_v12 = vand.u32 4294901760, %v16_v60  ;;  %v112_v21 = vand.u32 4294901760, %v111_v57 }
  0x10   :  { %89 = vmatpush.msra.mxu1 %v88_v43  ;;  %190 = vmatpush.msra.mxu2 %v826_v20  ;;  %v1374_v29 = vand.u32 4294901760, %v918_v58  ;;  %v958_v30 = vsub.f32 %v18_v48, %v920_v59  ;;  %v960_v31 = vand.u32 4294901760, %v387_v63  ;;  %v1376_v34 = vand.u32 4294901760, %v928_v61 }
  0x11   :  { %44 = vmatpush.msra.mxu0 %v817_v17  ;;  %240 = vmatpush.msra.mxu3 %v817_v17  ;;  %v966_v35 = vsub.f32 %v17_v53, %v930_v62  ;;  %v968_v36 = vand.u32 4294901760, %v15_v6  ;;  %v118_v38 = vand.u32 4294901760, %v117_v1  ;;  %v129_v40 = vsub.f32 %v902_v52, %v1375_v2 }
  0x12   :  { %95 = vmatpush.msra.mxu1 %v94_v49  ;;  %193 = vmatpush.msra.mxu2 %v842_v28  ;;  %v978_v41 = vsub.f32 %v388_v55, %v943_v7  ;;  %v980_v43 = vand.u32 4294901760, %v386_v13  ;;  %v124_v48 = vand.u32 4294901760, %v123_v8  ;;  %v985_v49 = vsub.f32 %v16_v60, %v950_v12  ;;  %v383_v60 = vld [vmem:[%s1371_s2 + $0x50] sm:$0xff] }
  0x13   :  { %46 = vmatpush.msra.mxu0 %v836_v25  ;;  %242 = vmatpush.msra.mxu3 %v836_v25  ;;  %1402 = vst [vmem:[#allocation2_spill] sm:$0xff] %v968_v36  ;;  %v135_v53 = vsub.f32 %v918_v58, %v1374_v29  ;;  %v1380_v55 = vand.u32 4294901760, %v958_v30  ;;  %v998_v57 = vand.u32 4294901760, %v385_v37  ;;  %v1383_v1 = vand.u32 4294901760, %v966_v35 }
  0x14   :  { %101 = vmatpush.msra.mxu1 %v100_v56  ;;  %196 = vmatpush.msra.mxu2 %v871_v39  ;;  %v996_v56 = vsub.f32 %v387_v63, %v960_v31  ;;  %v1010_v8 = vsub.f32 %v15_v6, %v968_v36  ;;  %v130_v63 = vand.u32 4294901760, %v129_v40  ;;  %v1015_v29 = vsub.f32 %v386_v13, %v980_v43 }
  0x15   :  { %48 = vmatpush.msra.mxu0 %v855_v32  ;;  %244 = vmatpush.msra.mxu3 %v855_v32  ;;  %v1017_v2 = vand.u32 4294901760, %v384_v50  ;;  %v1388_v6 = vand.u32 4294901760, %v985_v49  ;;  %v136_v40 = vand.u32 4294901760, %v135_v53  ;;  %v147_v13 = vsub.f32 %v958_v30, %v1380_v55  ;;  %v381_v55 = vld [vmem:[%s1371_s2 + $0x40] sm:$0xff] }
  0x16   :  { %107 = vmatpush.msra.mxu1 %v106_v0  ;;  %199 = vmatpush.msra.mxu2 %v881_v42  ;;  %1403 = vst [vmem:[#allocation3_spill] sm:$0xff] %v996_v56  ;;  %v141_v0 = vsub.f32 %v928_v61, %v1376_v34  ;;  %v382_v34 = vld [vmem:[%s1371_s2 + $0x48] sm:$0xff]  ;;  %v1389_v54 = vand.u32 4294901760, %v996_v56  ;;  %v1033_v51 = vsub.f32 %v385_v37, %v998_v57  ;;  %v1391_v44 = vand.u32 4294901760, %v1010_v8 }
  0x17   :  { %50 = vmatpush.msra.mxu0 %v885_v45  ;;  %246 = vmatpush.msra.mxu3 %v885_v45  ;;  %1404 = vst [vmem:[#allocation4_spill] sm:$0xff] %v1015_v29  ;;  %v1041_v53 = vand.u32 4294901760, %v382_v34  ;;  %v1392_v27 = vand.u32 4294901760, %v1015_v29  ;;  %v1070_v23 = vand.u32 4294901760, %v381_v55 }
  0x18   :  { %113 = vmatpush.msra.mxu1 %v112_v21  ;;  %202 = vmatpush.msra.mxu2 %v902_v52  ;;  %v1385_v21 = vand.u32 4294901760, %v978_v41  ;;  %1405 = vst [vmem:[#allocation5_spill] sm:$0xff] %v1033_v51  ;;  %v142_v37 = vand.u32 4294901760, %v141_v0  ;;  %v380_v0 = vld [vmem:[%s1371_s2 + $0x38] sm:$0xff] }
  0x19   :  { %52 = vmatpush.msra.mxu0 %v887_v46  ;;  %248 = vmatpush.msra.mxu3 %v887_v46  ;;  %v1088_v24 = vand.u32 4294901760, %v380_v0 }
  0x1a   :  { %119 = vmatpush.msra.mxu1 %v118_v38  ;;  %205 = vmatpush.msra.mxu2 %v918_v58  ;;  %v1025_v38 = vand.u32 4294901760, %v383_v60  ;;  %v433_v33 = vsub.f32 %v978_v41, %v1385_v21  ;;  %v439_v21 = vsub.f32 %v996_v56, %v1389_v54 }
  0x1b   :  { %54 = vmatpush.msra.mxu0 %v891_v47  ;;  %250 = vmatpush.msra.mxu3 %v891_v47  ;;  %v1116_v56 = vsub.f32 %v380_v0, %v1088_v24  ;;  %v374_v0 = vld [vmem:[%s1371_s2 + $0x8] sm:$0xff] }
  0x1c   :  { %125 = vmatpush.msra.mxu1 %v124_v48  ;;  %208 = vmatpush.msra.mxu2 %v928_v61  ;;  %v153_v48 = vsub.f32 %v966_v35, %v1383_v1  ;;  %v1052_v1 = vsub.f32 %v384_v50, %v1017_v2  ;;  %v1060_v26 = vsub.f32 %v383_v60, %v1025_v38  ;;  %v148_v50 = vand.u32 4294901760, %v147_v13  ;;  %v379_v13 = vld [vmem:[%s1371_s2 + $0x30] sm:$0xff] }
  0x1d   :  { %56 = vmatpush.msra.mxu0 %v920_v59  ;;  %252 = vmatpush.msra.mxu3 %v920_v59  ;;  %v434_v54 = vand.u32 4294901760, %v433_v33  ;;  %v440_v33 = vand.u32 4294901760, %v439_v21  ;;  %v377_v21 = vld [vmem:[%s1371_s2 + $0x20] sm:$0xff] }
  0x1e   :  { %131 = vmatpush.msra.mxu1 %v130_v63  ;;  %211 = vmatpush.msra.mxu2 %v958_v30  ;;  %v159_v63 = vsub.f32 %v985_v49, %v1388_v6  ;;  %v154_v60 = vand.u32 4294901760, %v153_v48  ;;  %v1078_v6 = vsub.f32 %v382_v34, %v1041_v53  ;;  %v445_v48 = vsub.f32 %v1015_v29, %v1392_v27 }
  0x1f   :  { %58 = vmatpush.msra.mxu0 %v930_v62  ;;  %254 = vmatpush.msra.mxu3 %v930_v62  ;;  %v1406_v27 = vand.u32 4294901760, %v1033_v51  ;;  %v1101_v29 = vsub.f32 %v381_v55, %v1070_v23  ;;  %v1408_v55 = vand.u32 4294901760, %v1052_v1 }
  0x20   :  { %137 = vmatpush.msra.mxu1 %v136_v40  ;;  %214 = vmatpush.msra.mxu2 %v966_v35  ;;  %v165_v40 = vsub.f32 %v1010_v8, %v1391_v44  ;;  %v160_v34 = vand.u32 4294901760, %v159_v63  ;;  %v1103_v63 = vand.u32 4294901760, %v379_v13 }
  0x21   :  { %60 = vmatpush.msra.mxu0 %v950_v12  ;;  %256 = vmatpush.msra.mxu3 %v950_v12  ;;  %v451_v22 = vsub.f32 %v1033_v51, %v1406_v27  ;;  %v446_v27 = vand.u32 4294901760, %v445_v48  ;;  %v457_v51 = vsub.f32 %v1052_v1, %v1408_v55 }
  0x22   :  { %143 = vmatpush.msra.mxu1 %v142_v37  ;;  %217 = vmatpush.msra.mxu2 %v985_v49  ;;  %v378_v37 = vld [vmem:[%s1371_s2 + $0x28] sm:$0xff]  ;;  %v166_v44 = vand.u32 4294901760, %v165_v40  ;;  %v1410_v40 = vand.u32 4294901760, %v1060_v26  ;;  %v1131_v55 = vsub.f32 %v379_v13, %v1103_v63  ;;  %v480_v13 = vand.u32 4294901760, %v1116_v56 }
  0x23   :  { %62 = vmatpush.msra.mxu0 %v968_v36  ;;  %258 = vmatpush.msra.mxu3 %v968_v36  ;;  %v1407_v36 = vand.u32 4294901760, %v808_v14  ;;  %v1118_v14 = vand.u32 4294901760, %v378_v37  ;;  %v452_v48 = vand.u32 4294901760, %v451_v22  ;;  %v375_v22 = vld [vmem:[%s1371_s2 + $0x10] sm:$0xff] }
  0x24   :  { %149 = vmatpush.msra.mxu1 %v148_v50  ;;  %220 = vmatpush.msra.mxu2 %v1010_v8  ;;  %v1400_v50 = vand.u32 4294901760, %v1078_v6 }
  0x25   :  { %269 = vmatpush.msrb.mxu0 %v1407_v36  ;;  %435 = vmatpush.msrb.mxu3 %v434_v54  ;;  %v1409_v36 = vand.u32 4294901760, %v811_v15  ;;  %v376_v54 = vld [vmem:[%s1371_s2 + $0x18] sm:$0xff]  ;;  %v1133_v15 = vand.u32 4294901760, %v377_v21 }
  0x26   :  { %390 = vmatpush.msrb.mxu2 %v943_v7  ;;  %155 = vmatpush.msra.mxu1 %v154_v60  ;;  %v463_v60 = vsub.f32 %v1060_v26, %v1410_v40  ;;  %v469_v40 = vsub.f32 %v1078_v6, %v1400_v50 }
  0x27   :  { %273 = vmatpush.msrb.mxu0 %v1409_v36  ;;  %441 = vmatpush.msrb.mxu3 %v440_v33  ;;  %v1411_v36 = vand.u32 4294901760, %v815_v16  ;;  %v1146_v33 = vsub.f32 %v378_v37, %v1118_v14  ;;  %v1148_v16 = vand.u32 4294901760, %v376_v54  ;;  %v486_v37 = vand.u32 4294901760, %v1131_v55 }
  0x28   :  { %392 = vmatpush.msrb.mxu2 %v960_v31  ;;  %161 = vmatpush.msra.mxu1 %v160_v34  ;;  %v458_v34 = vand.u32 4294901760, %v457_v51  ;;  %v464_v50 = vand.u32 4294901760, %v463_v60  ;;  %v470_v60 = vand.u32 4294901760, %v469_v40 }
  0x29   :  { %277 = vmatpush.msrb.mxu0 %v1411_v36  ;;  %447 = vmatpush.msrb.mxu3 %v446_v27  ;;  %v1412_v36 = vand.u32 4294901760, %v820_v18  ;;  %v1162_v27 = vsub.f32 %v377_v21, %v1133_v15  ;;  %v1414_v18 = vand.u32 4294901760, %v823_v19  ;;  %v1175_v21 = vsub.f32 %v376_v54, %v1148_v16 }
  0x2a   :  { %394 = vmatpush.msrb.mxu2 %v980_v43  ;;  %167 = vmatpush.msra.mxu1 %v166_v44  ;;  %v1413_v44 = vand.u32 4294901760, %v1101_v29  ;;  %v1415_v19 = vand.u32 4294901760, %v826_v20  ;;  %v487_v54 = vsub.f32 %v1131_v55, %v486_v37 }
  0x2b   :  { %281 = vmatpush.msrb.mxu0 %v1412_v36  ;;  %453 = vmatpush.msrb.mxu3 %v452_v48  ;;  %v481_v48 = vsub.f32 %v1116_v56, %v480_v13  ;;  %v1401_v36 = vand.u32 4294901760, %v1146_v33 }
  0x2c   :  { %336 = vmatpush.msrb.mxu1 %v779_v3  ;;  %396 = vmatpush.msrb.mxu2 %v998_v57  ;;  %v475_v51 = vsub.f32 %v1101_v29, %v1413_v44  ;;  %v1164_v3 = vand.u32 4294901760, %v375_v22  ;;  %v1177_v44 = vand.u32 4294901760, %v374_v0 }
  0x2d   :  { %285 = vmatpush.msrb.mxu0 %v1414_v18  ;;  %459 = vmatpush.msrb.mxu3 %v458_v34  ;;  %v498_v34 = vand.u32 4294901760, %v1162_v27 }
  0x2e   :  { %338 = vmatpush.msrb.mxu1 %v781_v4  ;;  %398 = vmatpush.msrb.mxu2 %v1017_v2  ;;  %v1182_v4 = vld [vmem:[%s1372_s0] sm:$0xff]  ;;  %v476_v40 = vand.u32 4294901760, %v475_v51  ;;  %v1193_v18 = vsub.f32 %v375_v22, %v1164_v3  ;;  %v482_v51 = vand.u32 4294901760, %v481_v48  ;;  %v493_v22 = vsub.f32 %v1146_v33, %v1401_v36 }
  0x2f   :  { %289 = vmatpush.msrb.mxu0 %v1415_v19  ;;  %465 = vmatpush.msrb.mxu3 %v464_v50  ;;  %v1199_v20 = vand.u32 4294901760, %v1182_v4  ;;  %v373_v50 = vld [vmem:[%s1371_s2] sm:$0xff]  ;;  %v1417_v19 = vand.u32 4294901760, %v871_v39 }
  0x30   :  { %340 = vmatpush.msrb.mxu1 %v783_v5  ;;  %400 = vmatpush.msrb.mxu2 %v1025_v38  ;;  %v1416_v5 = vand.u32 4294901760, %v842_v28  ;;  %v1210_v28 = vsub.f32 %v374_v0, %v1177_v44  ;;  %v510_v48 = vand.u32 4294901760, %v1193_v18  ;;  %v1220_v36 = vand.u32 4294901760, %v373_v50 }
  0x31   :  { %471 = vmatpush.msrb.mxu3 %v470_v60  ;;  %v499_v60 = vsub.f32 %v1162_v27, %v498_v34  ;;  %v1418_v0 = vand.u32 4294901760, %v881_v42  ;;  %v494_v39 = vand.u32 4294901760, %v493_v22  ;;  %169 = vmatmul.f32.vlgmr.msra.gmra.mxu1 %v1199_v20 }
  0x32   :  { %342 = vmatpush.msrb.mxu1 %v794_v9  ;;  %293 = vmatpush.msrb.mxu0 %v1416_v5  ;;  %v504_v9 = vand.u32 4294901760, %v1175_v21  ;;  %v488_v5 = vand.u32 4294901760, %v487_v54  ;;  %v516_v54 = vand.u32 4294901760, %v1210_v28  ;;  %v1240_v22 = vsub.f32 %v373_v50, %v1220_v36 }
  0x33   :  { %402 = vmatpush.msrb.mxu2 %v1041_v53  ;;  %477 = vmatpush.msrb.mxu3 %v476_v40  ;;  %v500_v42 = vand.u32 4294901760, %v499_v60  ;;  %v1421_v60 = vand.u32 4294901760, %v928_v61  ;;  %v1422_v50 = vand.u32 4294901760, %v958_v30  ;;  %v1424_v61 = vand.u32 4294901760, %v985_v49  ;;  %v1427_v49 = vld [vmem:[#allocation3_spill] sm:$0xff] }
  0x34   :  { %344 = vmatpush.msrb.mxu1 %v796_v10  ;;  %297 = vmatpush.msrb.mxu0 %v1417_v19  ;;  %v64_v10 = vsub.f32 %v1182_v4, %v1199_v20  ;;  %v505_v40 = vsub.f32 %v1175_v21, %v504_v9  ;;  %v1420_v19 = vand.u32 4294901760, %v918_v58  ;;  %v522_v58 = vand.u32 4294901760, %v1240_v22 }
  0x35   :  { %404 = vmatpush.msrb.mxu2 %v1070_v23  ;;  %483 = vmatpush.msrb.mxu3 %v482_v51  ;;  %v511_v51 = vsub.f32 %v1193_v18, %v510_v48 }
  0x36   :  { %346 = vmatpush.msrb.mxu1 %v798_v11  ;;  %301 = vmatpush.msrb.mxu0 %v1418_v0  ;;  %v1419_v11 = vand.u32 4294901760, %v902_v52  ;;  %v506_v52 = vand.u32 4294901760, %v505_v40 }
  0x37   :  { %406 = vmatpush.msrb.mxu2 %v1088_v24  ;;  %489 = vmatpush.msrb.mxu3 %v488_v5  ;;  %v517_v5 = vsub.f32 %v1210_v28, %v516_v54 }
  0x38   :  { %348 = vmatpush.msrb.mxu1 %v817_v17  ;;  %305 = vmatpush.msrb.mxu0 %v1419_v11  ;;  %v65_v17 = vand.u32 4294901760, %v64_v10 }
  0x39   :  { %408 = vmatpush.msrb.mxu2 %v1103_v63  ;;  %495 = vmatpush.msrb.mxu3 %v494_v39  ;;  %v518_v39 = vand.u32 4294901760, %v517_v5 }
  0x3a   :  { %350 = vmatpush.msrb.mxu1 %v836_v25  ;;  %309 = vmatpush.msrb.mxu0 %v1420_v19  ;;  %v512_v25 = vand.u32 4294901760, %v511_v51  ;;  %v66_v0 = vsub.f32 %v64_v10, %v65_v17 }
  0x3b   :  { %410 = vmatpush.msrb.mxu2 %v1118_v14  ;;  %501 = vmatpush.msrb.mxu3 %v500_v42 }
  0x3c   :  { %352 = vmatpush.msrb.mxu1 %v855_v32  ;;  %313 = vmatpush.msrb.mxu0 %v1421_v60  ;;  %v1423_v32 = vand.u32 4294901760, %v966_v35  ;;  %v67_v30 = vand.u32 4294901760, %v66_v0 }
  0x3d   :  { %412 = vmatpush.msrb.mxu2 %v1133_v15  ;;  %507 = vmatpush.msrb.mxu3 %v506_v52 }
  0x3e   :  { %354 = vmatpush.msrb.mxu1 %v885_v45  ;;  %317 = vmatpush.msrb.mxu0 %v1422_v50  ;;  %v523_v45 = vsub.f32 %v1240_v22, %v522_v58 }
  0x3f   :  { %414 = vmatpush.msrb.mxu2 %v1148_v16  ;;  %513 = vmatpush.msrb.mxu3 %v512_v25 }
  0x40   :  { %356 = vmatpush.msrb.mxu1 %v887_v46  ;;  %321 = vmatpush.msrb.mxu0 %v1423_v32  ;;  %v1425_v46 = vand.u32 4294901760, %v1010_v8  ;;  %v524_v35 = vand.u32 4294901760, %v523_v45  ;;  %v1428_v8 = vand.u32 4294901760, %v1427_v49 }
  0x41   :  { %416 = vmatpush.msrb.mxu2 %v1164_v3  ;;  %519 = vmatpush.msrb.mxu3 %v518_v39 }
  0x42   :  { %358 = vmatpush.msrb.mxu1 %v891_v47  ;;  %325 = vmatpush.msrb.mxu0 %v1424_v61  ;;  %v1426_v47 = vand.u32 4294901760, %v978_v41 }
  0x43   :  { %418 = vmatpush.msrb.mxu2 %v1177_v44  ;;  %68 = vmatmul.f32.vlgmr.msra.gmra.mxu0 %v67_v30 }
  0x44   :  { %360 = vmatpush.msrb.mxu1 %v920_v59  ;;  %223 = vmatmul.f32.vlgmr.msra.gmra.mxu2 %v64_v10  ;;  %v372_v59 = vmul.f32 %v1182_v4, %v1182_v4  ;;  %v1430_v10 = vld [vmem:[#allocation4_spill] sm:$0xff]  ;;  %v1432_v4 = vld [vmem:[#allocation5_spill] sm:$0xff] }
  0x45   :  { %329 = vmatpush.msrb.mxu0 %v1425_v46  ;;  %420 = vmatpush.msrb.mxu2 %v1220_v36  ;;  %v1433_v40 = vand.u32 4294901760, %v1432_v4 }
  0x46   :  { %362 = vmatpush.msrb.mxu1 %v930_v62  ;;  %262 = vmatmul.f32.vlgmr.msra.gmra.mxu3 %v65_v17  ;;  %v1429_v62 = vld [vmem:[#allocation2_spill] sm:$0xff] }
  0x47   :  { %533 = vmatpush.msra.mxu0 %v978_v41  ;;  %627 = vmatpush.msra.mxu2 %v1426_v47  ;;  %v1431_v41 = vand.u32 4294901760, %v1430_v10 }
  0x48   :  { %364 = vmatpush.msrb.mxu1 %v950_v12  ;;  %525 = vmatpush.msrb.mxu3 %v524_v35  ;;  %v1288_v12 = vand.u32 4294901760, %v372_v59 }
  0x49   :  { %536 = vmatpush.msra.mxu0 %v1427_v49  ;;  %631 = vmatpush.msra.mxu2 %v1428_v8 }
  0x4a   :  { %694 = vmatpush.msra.mxu3 %v943_v7  ;;  %366 = vmatpush.msrb.mxu1 %v1429_v62  ;;  %v422_v11 = vsub.f32 %v372_v59, %v1288_v12 }
  0x4b   :  { %539 = vmatpush.msra.mxu0 %v1430_v10  ;;  %635 = vmatpush.msra.mxu2 %v1431_v41 }
  0x4c   :  { %586 = vmatpush.msra.mxu1 %v943_v7  ;;  %696 = vmatpush.msra.mxu3 %v960_v31  ;;  %v1434_v7 = vand.u32 4294901760, %v1052_v1 }
  0x4d   :  { %542 = vmatpush.msra.mxu0 %v1432_v4  ;;  %639 = vmatpush.msra.mxu2 %v1433_v40 }
  0x4e   :  { %588 = vmatpush.msra.mxu1 %v960_v31  ;;  %698 = vmatpush.msra.mxu3 %v980_v43  ;;  %v1435_v31 = vand.u32 4294901760, %v1060_v26 }
  0x4f   :  { %331 = vmatmul.f32.vlgmr.msrb.gmra.mxu0 %v1199_v20  ;;  %643 = vmatpush.msra.mxu2 %v1434_v7 }
  0x50   :  { %590 = vmatpush.msra.mxu1 %v980_v43  ;;  %545 = vmatpush.msra.mxu0 %v1052_v1  ;;  %v423_v43 = vand.u32 4294901760, %v422_v11  ;;  %v1436_v1 = vand.u32 4294901760, %v1078_v6 }
  0x51   :  { %700 = vmatpush.msra.mxu3 %v998_v57  ;;  %368 = vmatmul.f32.vlgmr.msrb.gmra.mxu1 %v1199_v20 }
  0x52   :  { %548 = vmatpush.msra.mxu0 %v1060_v26  ;;  %592 = vmatpush.msra.mxu1 %v998_v57  ;;  %v1437_v57 = vand.u32 4294901760, %v1101_v29  ;;  %v424_v26 = vsub.f32 %v422_v11, %v423_v43 }
  0x53   :  { %647 = vmatpush.msra.mxu2 %v1435_v31  ;;  %702 = vmatpush.msra.mxu3 %v1017_v2 }
  0x54   :  { %551 = vmatpush.msra.mxu0 %v1078_v6  ;;  %594 = vmatpush.msra.mxu1 %v1017_v2  ;;  %v425_v2 = vand.u32 4294901760, %v424_v26 }
  0x55   :  { %651 = vmatpush.msra.mxu2 %v1436_v1  ;;  %704 = vmatpush.msra.mxu3 %v1025_v38 }
  0x56   :  { %554 = vmatpush.msra.mxu0 %v1101_v29  ;;  %596 = vmatpush.msra.mxu1 %v1025_v38  ;;  %v1438_v29 = vand.u32 4294901760, %v1146_v33 }
  0x57   :  { %655 = vmatpush.msra.mxu2 %v1437_v57  ;;  %706 = vmatpush.msra.mxu3 %v1041_v53 }
  0x58   :  { %557 = vmatpush.msra.mxu0 %v1116_v56  ;;  %598 = vmatpush.msra.mxu1 %v1041_v53 }
  0x59   :  { %659 = vmatpush.msra.mxu2 %v480_v13  ;;  %708 = vmatpush.msra.mxu3 %v1070_v23 }
  0x5a   :  { %560 = vmatpush.msra.mxu0 %v1131_v55  ;;  %600 = vmatpush.msra.mxu1 %v1070_v23 }
  0x5b   :  { %663 = vmatpush.msra.mxu2 %v486_v37  ;;  %710 = vmatpush.msra.mxu3 %v1088_v24 }
  0x5c   :  { %563 = vmatpush.msra.mxu0 %v1146_v33  ;;  %602 = vmatpush.msra.mxu1 %v1088_v24 }
  0x5d   :  { %667 = vmatpush.msra.mxu2 %v1438_v29  ;;  %712 = vmatpush.msra.mxu3 %v1103_v63 }
  0x5e   :  { %566 = vmatpush.msra.mxu0 %v1162_v27  ;;  %604 = vmatpush.msra.mxu1 %v1103_v63 }
  0x5f   :  { %671 = vmatpush.msra.mxu2 %v498_v34  ;;  %714 = vmatpush.msra.mxu3 %v1118_v14 }
  0x60   :  { %426 = vmatmul.f32.vlgmr.msrb.gmra.mxu2 %v425_v2  ;;  %527 = vmatmul.f32.vlgmr.msrb.gmra.mxu3 %v1288_v12 }
  0x61   :  { %569 = vmatpush.msra.mxu0 %v1175_v21  ;;  %606 = vmatpush.msra.mxu1 %v1118_v14 }
  0x62   :  { %675 = vmatpush.msra.mxu2 %v504_v9  ;;  %716 = vmatpush.msra.mxu3 %v1133_v15 }
  0x63   :  { %572 = vmatpush.msra.mxu0 %v1193_v18  ;;  %608 = vmatpush.msra.mxu1 %v1133_v15 }
  0x64   :  { %679 = vmatpush.msra.mxu2 %v510_v48  ;;  %718 = vmatpush.msra.mxu3 %v1148_v16 }
  0x65   :  { %575 = vmatpush.msra.mxu0 %v1210_v28  ;;  %610 = vmatpush.msra.mxu1 %v1148_v16 }
  0x66   :  { %683 = vmatpush.msra.mxu2 %v516_v54  ;;  %720 = vmatpush.msra.mxu3 %v1164_v3 }
  0x67   :  { %578 = vmatpush.msra.mxu0 %v1240_v22  ;;  %612 = vmatpush.msra.mxu1 %v1164_v3 }
  0x68   :  { %687 = vmatpush.msra.mxu2 %v522_v58  ;;  %722 = vmatpush.msra.mxu3 %v1177_v44 }
  0x69   :  { %581 = vmatmul.f32.vlgmr.msra.gmra.mxu0 %v422_v11  ;;  %689 = vmatmul.f32.vlgmr.msra.gmra.mxu2 %v1288_v12 }
  0x6a   :  { %614 = vmatpush.msra.mxu1 %v1177_v44  ;;  %724 = vmatpush.msra.mxu3 %v1220_v36 }
  0x6b   :  { %726 = vmatmul.f32.vlgmr.msra.gmra.mxu3 %v1288_v12 }
  0x6c   :  { %616 = vmatpush.msra.mxu1 %v1220_v36 }
  0x6d   :  { %620 = vmatmul.f32.vlgmr.msra.gmra.mxu1 %v423_v43 }
  0xae   :  { %v170_v24 = vpop.f32.mrf.mxu1 }
  0xc0   :  { %v69_v23 = vpop.f32.mrf.mxu0 }
  0xc1   :  { %v171_v36 = vadd.f32 %v170_v24, %v69_v23 }
  0xc7   :  { %v224_v56 = vpop.f32.mrf.mxu2 }
  0xc8   :  { %v225_v34 = vadd.f32 %v224_v56, %v171_v36 }
  0xc9   :  { %v263_v6 = vpop.f32.mrf.mxu3 }
  0xca   :  { %v264_v9 = vadd.f32 %v263_v6, %v225_v34 }
  0xcc   :  { %v332_v38 = vpop.f32.mrf.mxu0 }
  0xcd   :  { %v333_v54 = vadd.f32 %v332_v38, %v264_v9 }
  0xce   :  { %v369_v53 = vpop.f32.mrf.mxu1 }
  0xcf   :  { %v370_v22 = vadd.f32 %v369_v53, %v333_v54 }
  0xe3   :  { %v427_v63 = vpop.f32.mrf.mxu2  ;;  %v528_v14 = vpop.f32.mrf.mxu3 }
  0xe4   :  { %v529_v55 = vadd.f32 %v528_v14, %v427_v63 }
  0xe6   :  { %v582_v15 = vpop.f32.mrf.mxu0 }
  0xe7   :  { %v583_v13 = vadd.f32 %v582_v15, %v529_v55 }
  0xea   :  { %v621_v33 = vpop.f32.mrf.mxu1 }
  0xeb   :  { %v622_v16 = vadd.f32 %v621_v33, %v583_v13 }
  0xec   :  { %v690_v37 = vpop.f32.mrf.mxu2 }
  0xed   :  { %v691_v27 = vadd.f32 %v690_v37, %v622_v16 }
  0xee   :  { %v727_v3 = vpop.f32.mrf.mxu3 }
  0xef   :  { %v728_v21 = vadd.f32 %v727_v3, %v691_v27 }
  0xf1   :  { %v730_v44 = vmax.f32 %v728_v21, 1e-10 }
  0xf3   :  { %748 = vrsqrt.f32 %v730_v44  ;;  %vm737_vm1 = vweird.f32 %v730_v44 }
  0xf9   :  { %v749_v18 = vpop.eup %748 }
  0xfa   :  { %v732_v20 = vmul.f32 %v749_v18, %v730_v44  ;;  %vm738_vm0 = vweird.f32 %v749_v18 }
  0xfb   :  { %vm739_vm2 = vmor %vm737_vm1, %vm738_vm0 }
  0xfc   :  { %v733_v28 = vmul.f32 %v749_v18, %v732_v20 }
  0xfe   :  { %v734_v48 = vmul.f32 0.5, %v733_v28 }
 0x100   :  { %v735_v42 = vsub.f32 1.5, %v734_v48 }
 0x102   :  { %v736_v51 = vmul.f32 %v749_v18, %v735_v42 }
 0x104   :  { %v740_v19 = vsel %vm739_vm2, %v749_v18, %v736_v51 }
 0x105   :  { %v741_v17 = vmul.f32 %v740_v19, %v370_v22 }
 0x107   :  { %743 = vst.msk [vmem:[%s1373_s3] sm:$0xff] %vm742_vm3, %v741_v17 }

</bundles_post_ra>
